<compile_context>
chip_gen: v7x
topology: tpu7x:2x2x1
jax: 0.10.0
libtpu: 0.0.40
codegen_flags: <defaults>
</compile_context>

<pallas_src>
import math
import numpy as np
import jax
import jax.numpy as jnp
from jax.experimental import pallas as pl
from jax.experimental.pallas import tpu as pltpu


def build_chess_pe(d_model: int) -> np.ndarray:
    """Deterministic replication of the PyTorch PositionalEncoding buffer (shape (64, d_model))."""
    pe = np.zeros((64, d_model), dtype=np.float32)
    for pos in range(64):
        row, col = pos // 8, pos % 8
        for i in range(0, d_model, 4):
            pe[pos, i] = math.sin(row / 10000 ** (i / d_model))
            if i + 1 < d_model:
                pe[pos, i + 1] = math.cos(row / 10000 ** (i / d_model))
            if i + 2 < d_model:
                pe[pos, i + 2] = math.sin(col / 10000 ** ((i + 2) / d_model))
            if i + 3 < d_model:
                pe[pos, i + 3] = math.cos(col / 10000 ** ((i + 3) / d_model))
    return pe


def prepare_pe_qkv_params(pe_full, w_qkv, b_qkv, seq_len: int, lane: int = 128):
    """One-time parameter packing (outside the per-call path).

    * pe is sliced to seq_len and transposed to (D, S) so it matches the CNN's (B, C, S)
      activation layout inside the kernel (no per-call transpose of activations or pe).
    * [W_q | W_k | W_v] columns and the bias are zero-padded so the output width is a
      multiple of 128 lanes (lane-dense stores, wider MXU pass).
    """
    d_model, e = w_qkv.shape
    n_pad = ((e + lane - 1) // lane) * lane
    w_pad = jnp.zeros((d_model, n_pad), w_qkv.dtype).at[:, :e].set(w_qkv)
    b_pad = jnp.zeros((1, n_pad), b_qkv.dtype).at[:, :e].set(b_qkv.reshape(1, e))
    pe_t = jnp.asarray(pe_full[:seq_len, :].T)  # (D, S)
    return pe_t, w_pad, b_pad, e


def _pe_qkv_fused_kernel(x_ref, pe_t_ref, w_ref, b_ref, o_ref):
    # x_ref:    (1, D, S)   one batch of CNN features in channels-major layout (no wrapper transpose)
    # pe_t_ref: (D, S)      positional-encoding buffer, pre-transposed once at setup, broadcast over batch
    # w_ref:    (D, Npad)   [W_q | W_k | W_v | 0-pad] packed along N, Npad a multiple of 128
    # b_ref:    (1, Npad)
    # o_ref:    (1, S, Npad) lane-dense output block
    xp = x_ref[0] + pe_t_ref[...]                      # PE add: VPU filler under the MXU matmul
    out = jax.lax.dot_general(                         # contract over D: (D,S) x (D,Npad) -> (S,Npad)
        xp, w_ref[...],
        dimension_numbers=(((0,), (0,)), ((), ())),
        preferred_element_type=jnp.float32)
    o_ref[0] = (out + b_ref[...]).astype(o_ref.dtype)


@jax.jit
def pe_qkv_forward(x_bchw, pe_t, w_pad, b_pad):
    """Fused ChessTransformerEncoder front end:
         (B, C, H, W) -> flatten to (B, C, S) -> +PE -> packed QKV projection, padded to Npad lanes.
    Returns (B, S, Npad); the caller slices [..., :3*D] for the Q/K/V split."""
    B, C, H, W = x_bchw.shape
    S = H * W
    n_pad = w_pad.shape[1]
    x_cs = x_bchw.reshape(B, C, S)                     # free reshape; transpose is folded into the kernel
    out = pl.pallas_call(
        _pe_qkv_fused_kernel,
        out_shape=jax.ShapeDtypeStruct((B, S, n_pad), x_bchw.dtype),
        grid=(B,),
        in_specs=[
            pl.BlockSpec((1, C, S), lambda b: (b, 0, 0)),
            pl.BlockSpec((C, S), lambda b: (0, 0)),
            pl.BlockSpec((C, n_pad), lambda b: (0, 0)),
            pl.BlockSpec((1, n_pad), lambda b: (0, 0)),
        ],
        out_specs=pl.BlockSpec((1, S, n_pad), lambda b: (b, 0, 0)),
        compiler_params=pltpu.CompilerParams(dimension_semantics=("parallel",)),
    )(x_cs, pe_t, w_pad, b_pad)
    return out


if __name__ == "__main__":
    # Small shapes consistent with ChessTransformerEncoder: d_model scaled 512 -> 32, 8x8 board.
    B, C, H, W = 2, 32, 8, 8
    S = H * W                                          # 64 chess squares
    key = jax.random.PRNGKey(0)
    kx, kw, kb = jax.random.split(key, 3)
    x = jax.random.normal(kx, (B, C, H, W), dtype=jnp.float32)             # CNN-tower output layout
    w_qkv = 0.05 * jax.random.normal(kw, (C, 3 * C), dtype=jnp.float32)    # packed [W_q | W_k | W_v]
    b_qkv = 0.05 * jax.random.normal(kb, (3 * C,), dtype=jnp.float32)

    pe_full = jnp.asarray(build_chess_pe(C))           # (64, d_model) buffer from __init__

    # One-time parameter packing (PE transpose, QKV zero-pad to 128 lanes).
    pe_t, w_pad, b_pad, E = prepare_pe_qkv_params(pe_full, w_qkv, b_qkv, S)

    out = jax.block_until_ready(pe_qkv_forward(x, pe_t, w_pad, b_pad))     # (B, S, Npad)

    # Pure-JAX reference of the module semantics: encoder glue + PositionalEncoding + QKV in_proj.
    x_seq = jnp.transpose(x.reshape(B, C, S), (0, 2, 1))                   # (B, S, C)
    ref_pe = x_seq + pe_full[None, :S, :]                                  # PositionalEncoding.forward
    ref_qkv = jnp.einsum("bsd,de->bse", ref_pe, w_qkv) + b_qkv[None, None, :]

    assert out.shape == (B, S, w_pad.shape[1])
    assert jnp.allclose(out[..., :E], ref_qkv, atol=1e-2, rtol=1e-2), "fused PE+QKV mismatch"
    assert jnp.allclose(out[..., E:], 0.0), "zero-padded lanes are not zero"
    print("KERNEL_OK")
</pallas_src>

<mosaic_0001>
module attributes {stable_mosaic.version = 11 : i64} {
  func.func @_pe_qkv_fused_kernel(%arg0: i32, %arg1: memref<1x32x64xf32, #tpu.memory_space<vmem>>, %arg2: memref<32x64xf32, #tpu.memory_space<vmem>>, %arg3: memref<32x128xf32, #tpu.memory_space<vmem>>, %arg4: memref<1x128xf32, #tpu.memory_space<vmem>>, %arg5: memref<1x64x128xf32, #tpu.memory_space<vmem>>) attributes {dimension_semantics = [#tpu.dimension_semantics<parallel>], iteration_bounds = array<i64: 2>, scalar_prefetch = 0 : i64, scratch_operands = 0 : i64, tpu.core_type = #tpu.core_type<tc>, window_params = [{transform_indices = @transform_0, window_bounds = array<i64: 1, 32, 64>}, {pipeline_mode = #tpu.pipeline_mode<synchronous>, transform_indices = @transform_1, window_bounds = array<i64: 32, 64>}, {pipeline_mode = #tpu.pipeline_mode<synchronous>, transform_indices = @transform_2, window_bounds = array<i64: 32, 128>}, {pipeline_mode = #tpu.pipeline_mode<synchronous>, transform_indices = @transform_3, window_bounds = array<i64: 1, 128>}, {transform_indices = @transform_4, window_bounds = array<i64: 1, 64, 128>}]} {
    %c0 = arith.constant 0 : index
    %c0_0 = arith.constant 0 : index
    %c0_1 = arith.constant 0 : index
    %0 = vector.load %arg1[%c0, %c0_0, %c0_1] : memref<1x32x64xf32, #tpu.memory_space<vmem>>, vector<1x32x64xf32>
    %1 = vector.shape_cast %0 : vector<1x32x64xf32> to vector<32x64xf32>
    %c0_2 = arith.constant 0 : index
    %c0_3 = arith.constant 0 : index
    %2 = vector.load %arg2[%c0_2, %c0_3] : memref<32x64xf32, #tpu.memory_space<vmem>>, vector<32x64xf32>
    %3 = arith.addf %1, %2 : vector<32x64xf32>
    %c0_4 = arith.constant 0 : index
    %c0_5 = arith.constant 0 : index
    %4 = vector.load %arg3[%c0_4, %c0_5] : memref<32x128xf32, #tpu.memory_space<vmem>>, vector<32x128xf32>
    %cst = arith.constant dense<0.000000e+00> : vector<64x128xf32>
    %5 = tpu.matmul %3, %4, %cst {dimension_numbers = #tpu.dot_dimension_numbers<[0], [0], [1], [1], [0, 1, 1, 1], [], []>} : vector<32x64xf32>, vector<32x128xf32>, vector<64x128xf32> -> vector<64x128xf32>
    %c0_6 = arith.constant 0 : index
    %c0_7 = arith.constant 0 : index
    %6 = vector.load %arg4[%c0_6, %c0_7] : memref<1x128xf32, #tpu.memory_space<vmem>>, vector<1x128xf32>
    %7 = vector.broadcast %6 : vector<1x128xf32> to vector<64x128xf32>
    %8 = arith.addf %5, %7 : vector<64x128xf32>
    %c0_8 = arith.constant 0 : index
    %c0_9 = arith.constant 0 : index
    %c0_10 = arith.constant 0 : index
    %9 = vector.load %arg5[%c0_8, %c0_9, %c0_10] : memref<1x64x128xf32, #tpu.memory_space<vmem>>, vector<1x64x128xf32>
    %10 = vector.shape_cast %9 : vector<1x64x128xf32> to vector<64x128xf32>
    %11 = vector.shape_cast %8 : vector<64x128xf32> to vector<1x64x128xf32>
    tpu.vector_store %arg5[%c0_8, %c0_9, %c0_10], %11 {strides = array<i32>} : memref<1x64x128xf32, #tpu.memory_space<vmem>>, vector<1x64x128xf32>,
    return
  }
  func.func @transform_0(%arg0: i32) -> (i32, i32, i32) {
    %c0_i32 = arith.constant 0 : i32
    %c0_i32_0 = arith.constant 0 : i32
    %c0_i32_1 = arith.constant 0 : i32
    return %arg0, %c0_i32, %c0_i32_0 : i32, i32, i32
  }
  func.func @transform_1(%arg0: i32) -> (i32, i32) {
    %c0_i32 = arith.constant 0 : i32
    %c0_i32_0 = arith.constant 0 : i32
    %c0_i32_1 = arith.constant 0 : i32
    return %c0_i32, %c0_i32_0 : i32, i32
  }
  func.func @transform_2(%arg0: i32) -> (i32, i32) {
    %c0_i32 = arith.constant 0 : i32
    %c0_i32_0 = arith.constant 0 : i32
    %c0_i32_1 = arith.constant 0 : i32
    return %c0_i32, %c0_i32_0 : i32, i32
  }
  func.func @transform_3(%arg0: i32) -> (i32, i32) {
    %c0_i32 = arith.constant 0 : i32
    %c0_i32_0 = arith.constant 0 : i32
    %c0_i32_1 = arith.constant 0 : i32
    return %c0_i32, %c0_i32_0 : i32, i32
  }
  func.func @transform_4(%arg0: i32) -> (i32, i32, i32) {
    %c0_i32 = arith.constant 0 : i32
    %c0_i32_0 = arith.constant 0 : i32
    %c0_i32_1 = arith.constant 0 : i32
    return %arg0, %c0_i32, %c0_i32_0 : i32, i32, i32
  }
}

</mosaic_0001>

<bundles_post_ra>
// kernel: pe_qkv_forward.1
= control target key start
LH: loop header
LB: loop body
LE: loop exit
PB: predicated region body
PF: predicated region fallthrough
CT: control target
= control target key end

     0   :  { %9 = vsyncpa [#allocation3], 0  ;;  %s808_s0 = inlined_call_operand.vmem [shape: f32[2,32,64], index: 0, kind: input, shape index: {}]   ;;  %s809_s1 = inlined_call_operand.vmem [shape: f32[32,64], index: 1, kind: input, shape index: {}]   ;;  %s810_s2 = inlined_call_operand.vmem [shape: f32[32,128], index: 2, kind: input, shape index: {}]   ;;  %s811_s3 = inlined_call_operand.vmem [shape: f32[1,128], index: 3, kind: input, shape index: {}]   ;;  %s812_s4 = inlined_call_operand.hbm [shape: f32[2,64,128], index: 4, kind: output, shape index: {}]  }
   0x1   :  { %11 = vsyncpa [#allocation3 + $0x1], 0  ;;  %s666_s15 = smov 0   ;;  %s668_s16 = smov 0  }
   0x2   :  { %s670_s17 = smov 0   ;;  %s672_s18 = smov 0  }
   0x3 LB: > { %s687_s19 = sadd.s32 4294967295, %s636_s18   ;;  %s465_s20 = sadd.s32 4294967294, %s636_s18   ;;  %s636_s18 = sphi %s672_s18, %s818_s18   ;;  %s632_s17 = sphi %s670_s17, %s817_s17   ;;  %s628_s16 = sphi %s668_s16, %s816_s16   ;;  %s624_s15 = sphi %s666_s15, %s815_s15  }
   0x4   : > { %s691_s21 = sadd.s32 1, %s636_s18   ;;  %s113_s22 = sadd.s32 1, %s632_s17 }
   0x5   : > { %s110_s23 = ssub.s32 %s636_s18, %s691_s21  ;;  %p123_p0 = scmp.ne.s32.totalorder %s632_s17, %s628_s16 }
   0x6   : > { %p111_p1 = scmp.eq.s32.totalorder %s110_s23, 0  ;;  %p124_p2 = scmp.eq.s32.totalorder %s687_s19, 1 }
   0x7   : > { %p129_p3 = scmp.ne.s32.totalorder %s628_s16, %s624_s15  ;;  %p130_p4 = scmp.eq.s32.totalorder %s465_s20, 1 }
   0x8   : > { %s702_s24 = scalar_select %p111_p1, %s632_s17, %s113_s22  }
   0x9   : > { %p704_p5 = por %p124_p2, %p123_p0  ;;  %p708_p6 = por %p130_p4, %p129_p3 }
   0xa   : > { %p468_p7 = scmp.ge.s32.totalorder %s636_s18, 1  ;;  %p165_p8 = scmp.lt.s32.totalorder %s636_s18, 3 }
   0xc   : > { %p166_p9 = pnand %p468_p7, %p165_p8 }
   0xd   : > { %p191_p10 = scmp.lt.s32.totalorder (!%p166_p9), %s687_s19, 1  ;;  %v208_v0 = vld [vmem:[%s810_s2] sm:$0xff] (!%p166_p9)  ;;  %v209_v1 = vld [vmem:[%s810_s2 + $0x8] sm:$0xff] (!%p166_p9)  ;;  %v210_v8 = vld [vmem:[%s810_s2 + $0x10] sm:$0xff] (!%p166_p9)  ;;  %vm251_vm0 = vcmask (!%p166_p9), 261120   ;;  %s487_s10 = sshll.u32 (!%p166_p9), %s687_s19, 10 }
   0xe   : > { %169 = sbr.rel (%p166_p9) target bundleno = 415 (0x19f), region = 36  ;;  %v520_v2 = vpack.c.bf16 (!%p166_p9), %v209_v1, %v208_v0  ;;  %v200_v3 = vld [vmem:[%s809_s1] sm:$0xff] (!%p166_p9)  ;;  %v201_v6 = vld [vmem:[%s809_s1 + $0x8] sm:$0xff] (!%p166_p9)  ;;  %v211_v9 = vld [vmem:[%s810_s2 + $0x18] sm:$0xff] (!%p166_p9)  ;;  %s761_s14 = scalar_lea.hbm (!%p166_p9), %s812_s4, %s487_s10 }
   0xf   : > { %v524_v10 = vpack.c.bf16 (!%p166_p9), %v211_v9, %v210_v8  ;;  %v202_v13 = vld [vmem:[%s809_s1 + $0x10] sm:$0xff] (!%p166_p9)  ;;  %v203_v16 = vld [vmem:[%s809_s1 + $0x18] sm:$0xff] (!%p166_p9)  ;;  %v472_v26 = vld [vmem:[%s811_s3] ss:$0 sm:$0xff] (!%p166_p9)  ;;  %s638_s22 = smov (!%p166_p9), [#allocation2]  }
  0x10   : > { %521 = vmatprep.subr.bf16.mxu0 (!%p166_p9), %v520_v2  ;;  %528 = vmatprep.subr.bf16.mxu1 (!%p166_p9), %v520_v2  ;;  %s578_s23 = sshll.u32 (!%p166_p9), %s638_s22, 4  ;;  %s579_s23 = int_to_ptr.vmem [resolvable:$false] %s578_s23 }
  0x11   : > { %523 = vmatpush3.bf16.msra.mxu0 (!%p166_p9), %v520_v2  ;;  %530 = vmatpush3.bf16.msra.mxu1 (!%p166_p9), %v520_v2  ;;  %s580_s27 = scalar_lea.vmem (!%p166_p9), %s579_s23, 2048 }
  0x12   : > { %525 = vmatprep.subr.bf16.mxu0 (!%p166_p9), %v524_v10  ;;  %529 = vmatprep.subr.bf16.mxu1 (!%p166_p9), %v524_v10 }
  0x15   : > { %s192_s5 = scalar_select %p191_p10, %s687_s19, 1  ;;  %527 = vmatpush3.bf16.msra.mxu0 %v524_v10  ;;  %531 = vmatpush3.bf16.msra.mxu1 %v524_v10 }
  0x17   : > { %s486_s6 = sshll.u32 %s192_s5, 5  ;;  %s188_s5 = sand.u32 1, %s628_s16  }
  0x18   : > { %s195_s11 = scalar_lea.vmem %s808_s0, %s486_s6  ;;  %s469_s6 = sshll.u32 %s188_s5, 6 }
  0x19   : > { %v196_v4 = vld [vmem:[%s195_s11] sm:$0xff]  ;;  %v197_v5 = vld [vmem:[%s195_s11 + $0x8] sm:$0xff]  ;;  %v198_v12 = vld [vmem:[%s195_s11 + $0x10] sm:$0xff]  ;;  %s190_s9 = scalar_lea.vmem [#allocation2], %s469_s6  ;;  %s767_s20 = scalar_lea.sflag [#allocation3], %s188_s5 }
  0x1a   : > { %v204_v7 = vadd.f32 %v200_v3, %v196_v4  ;;  %v205_v11 = vadd.f32 %v201_v6, %v197_v5  ;;  %v206_v14 = vadd.f32 %v202_v13, %v198_v12  ;;  %v199_v15 = vld [vmem:[%s195_s11 + $0x18] sm:$0xff]  ;;  %s403_s11 = sshll.u32 %s190_s9, 4  ;;  %s763_s11 = int_to_ptr.vmem [resolvable:$true] %s403_s11 }
  0x1b   : > { %v207_v17 = vadd.f32 %v203_v16, %v199_v15  ;;  %s574_s19 = scalar_lea.vmem %s763_s11, 1024  ;;  %p581_p0 = scmp.lt.s32.totalorder %s763_s11, %s579_s23 }
  0x1c   : > { %219 = vxpose.xlu0.b32.start [1/4] (short) (narrow) %v204_v7, 64  ;;  %p575_p11 = scmp.ne.s32.totalorder %s763_s11, %s574_s19  ;;  %p582_p1 = scmp.lt.s32.totalorder %s580_s27, %s574_s19 }
  0x1e   : > { %p576_p12 = pnand %p575_p11, %p704_p5  ;;  %p583_p2 = por %p582_p1, %p581_p0 }
  0x20   : > { %220 = vxpose.xlu0.b32.cont [2/4] (short) (narrow) %v205_v11, 64  ;;  %p577_p13 = pneg %p576_p12 }
  0x22   : > { %p584_p3 = pnand %p583_p2, %p577_p13 }
  0x24   : > { %221 = vxpose.xlu0.b32.cont [3/4] (short) (narrow) %v206_v14, 64 }
  0x28   : > { %222 = vxpose.xlu0.b32.end [4/4] (short) (narrow) %v207_v17, 64 }
  0x9c   : > { %v235_v18 = vpop.trf.xlu0 }
  0x9d   : > { %508 = vmatprep.mubr.msk.f32.mxu0 %vm251_vm0, %v235_v18 }
  0xa0   : > { %v236_v19 = vpop.trf.xlu0 }
  0xa1   : > { %509 = vmatmul.mubr.msk.f32.vlgmr.msra.gmra.mrb[0].mxu0 %vm251_vm0, %v236_v19 }
  0xa4   : > { %v237_v20 = vpop.trf.xlu0 }
  0xa5   : > { %511 = vmatprep.mubr.msk.f32.mxu0 %vm251_vm0, %v237_v20 }
  0xa8   : > { %v238_v21 = vpop.trf.xlu0 }
  0xa9   : > { %512 = vmatmul.mubr.msk.f32.gmra.mrb[2].mxu0 %vm251_vm0, %v238_v21 }
  0xac   : > { %v239_v22 = vpop.trf.xlu0 }
  0xad   : > { %514 = vmatprep.mubr.msk.f32.mxu1 %vm251_vm0, %v239_v22 }
  0xb0   : > { %v240_v23 = vpop.trf.xlu0 }
  0xb1   : > { %515 = vmatmul.mubr.msk.f32.vlgmr.msra.gmra.mrb[0].mxu1 %vm251_vm0, %v240_v23 }
  0xb4   : > { %v241_v24 = vpop.trf.xlu0 }
  0xb5   : > { %517 = vmatprep.mubr.msk.f32.mxu1 %vm251_vm0, %v241_v24 }
  0xb8   : > { %v242_v25 = vpop.trf.xlu0 }
  0xb9   : > { %518 = vmatmul.mubr.msk.f32.gmra.mrb[2].mxu1 %vm251_vm0, %v242_v25 }
 0x174   : > { %v510_v27 = vpop.f32.mrb[0].mxu0 }
 0x175   : > { %v348_v28 = vadd.f32 %v510_v27, %v472_v26  ;;  %v342_v29 = vpop.f32.mrb[1].mxu0 }
 0x176   : > { %v343_v30 = vadd.f32 %v472_v26, %v342_v29 }
 0x177   : > { %382 = vst [vmem:[%s190_s9 + $0x8] sm:$0xff] %v348_v28 }
 0x178   : > { %381 = vst [vmem:[%s190_s9] sm:$0xff] %v343_v30 }
 0x17c   : > { %v513_v31 = vpop.f32.mrb[2].mxu0 }
 0x17d   : > { %v358_v32 = vadd.f32 %v513_v31, %v472_v26  ;;  %v352_v33 = vpop.f32.mrb[3].mxu0 }
 0x17e   : > { %v353_v34 = vadd.f32 %v472_v26, %v352_v33 }
 0x17f   : > { %384 = vst [vmem:[%s190_s9 + $0x18] sm:$0xff] %v358_v32 }
 0x180   : > { %383 = vst [vmem:[%s190_s9 + $0x10] sm:$0xff] %v353_v34 }
 0x184   : > { %v516_v35 = vpop.f32.mrb[0].mxu1 }
 0x185   : > { %v368_v36 = vadd.f32 %v516_v35, %v472_v26  ;;  %v362_v37 = vpop.f32.mrb[1].mxu1 }
 0x186   : > { %v363_v38 = vadd.f32 %v472_v26, %v362_v37 }
 0x187   : > { %386 = vst [vmem:[%s190_s9 + $0x28] sm:$0xff] %v368_v36 }
 0x188   : > { %385 = vst [vmem:[%s190_s9 + $0x20] sm:$0xff] %v363_v38 }
 0x18c   : > { %v519_v39 = vpop.f32.mrb[2].mxu1 }
 0x18d   : > { %v378_v40 = vadd.f32 %v519_v39, %v472_v26  ;;  %v372_v41 = vpop.f32.mrb[3].mxu1 }
 0x18e   : > { %v373_v42 = vadd.f32 %v472_v26, %v372_v41 }
 0x18f   : > { %388 = vst [vmem:[%s190_s9 + $0x38] sm:$0xff] %v378_v40 }
 0x190   : > { %387 = vst [vmem:[%s190_s9 + $0x30] sm:$0xff] %v373_v42 }
 0x191   : > { %587 = shalt.err (!%p584_p3)
}
 0x192   : > { %s588_s28 = scalar_lea.hbm %s761_s14, 1024  ;;  %s592_s5 = scalar_lea.hbm %s812_s4, 2048 }
 0x193   : > { %p589_p4 = scmp.ne.s32.totalorder %s761_s14, %s588_s28  ;;  %p593_p9 = scmp.lt.u32.totalorder %s761_s14, %s812_s4 }
 0x194   : > { %p594_p10 = scmp.lt.u32.totalorder %s592_s5, %s588_s28  ;;  %p596_p12 = scmp.lt.u32.totalorder %s588_s28, %s761_s14 }
 0x195   : > { %p590_p7 = pnand %p589_p4, %p704_p5 }
 0x196   : > { %p595_p11 = por %p594_p10, %p593_p9 }
 0x197   : > { %p591_p8 = pneg %p590_p7 }
 0x198   : > { %p597_p13 = por %p596_p12, %p595_p11 }
 0x19a   : > { %p598_p0 = pnand %p597_p13, %p591_p8 }
 0x19c   : > { %601 = shalt.err (!%p598_p0)
}
 0x19d   : > { %s639_s8 = smov 128   ;;  %s640_s9 = smov 8  }
 0x19e   : > { %532 = dma.vmem_to_hbm [thread:$0]  (%p704_p5), %s763_s11, 1024, %s761_s14, %s767_s20, %s639_s8, %s639_s8, %s640_s9  }
 0x19f PF: > { %p538_p1 = scmp.ge.s32.totalorder %s636_s18, 2  ;;  %s418_s10 = sand.u32 1, %s624_s15  }
 0x1a0   : > { %s419_s12 = scalar_lea.sflag [#allocation3], %s418_s10 }
 0x1a1   : > { %p535_p2 = pnand %p538_p1, %p708_p6 }
 0x1a3   : > { %619 = dma.done.wait (!%p535_p2), %s419_s12, 1024  }
 0x1a4   : > { %621 = vsyncadd (!%p535_p2), %s419_s12, 4294966272  ;;  %p14_p3 = scmp.ge.s32.totalorder %s691_s21, 4   ;;  %s815_s15 = smov %s628_s16 }
 0x1a5   : > { %s816_s16 = smov %s632_s17  ;;  %s817_s17 = smov %s702_s24 }
 0x1a6   : > { %s818_s18 = smov %s691_s21  ;;  %16 = sbr.rel (!%p14_p3) target bundleno = 3 (0x3), region = 71 }
 0x1ad   :  { %424 = vsyncpa [#allocation3], 1 }
 0x1ae   :  { %426 = vsyncpa [#allocation3 + $0x1], 1 }

</bundles_post_ra>
